<compile_context>
chip_gen: v7x
topology: tpu7x:2x2x1
jax: 0.10.0
libtpu: 0.0.40
codegen_flags: <defaults>
</compile_context>

<pallas_src>
import functools

import jax
import jax.numpy as jnp
import numpy as np
from jax.experimental import pallas as pl
from jax.experimental.pallas import tpu as pltpu

LANES = 128


# ----------------------------------------------------------------------------
# Fused LeNet kernel (one grid step = one batch tile of `tb` samples)
# ----------------------------------------------------------------------------
def _lenet_kernel(p_ref, w1_ref, b1_ref, w2_ref, b2_ref,
                  wf1_ref, bf1_ref, wf2_ref, bf2_ref, wf3_ref, bf3_ref,
                  out_ref, pool1_ref, *, tb, pooled_w, k):
    f32 = jnp.float32
    bf16 = jnp.bfloat16
    R = pool1_ref.shape[0]                 # PH*PW*tb pooled positions * samples

    # --- conv1 (one bf16 GEMM over all 4 pool-window offsets) + bias + ReLU
    #     + 2x2 maxpool (max over the 4 row chunks) ---------------------------
    y = jnp.dot(p_ref[0], w1_ref[...], preferred_element_type=f32)   # (4R, 128)
    m = jnp.maximum(jnp.maximum(y[0:R], y[R:2 * R]),
                    jnp.maximum(y[2 * R:3 * R], y[3 * R:4 * R]))
    # per-channel bias + ReLU commute with the max -> apply once, after.
    pool1_ref[...] = jnp.maximum(m + b1_ref[...], 0.0)                # f32

    # --- conv2 + bias + ReLU + 2x2 maxpool (conv2 output 2x2 IS the window) --
    # Compact weights: w2_ref[(kh*k+kw)*8 : +8, :] is the (ic=8, oc=128) tap.
    # LHS per tap: 8-lane slice of pool1, wide contiguous row slice covering
    # both output rows (dead middle rows cost nothing).
    p1 = pool1_ref[...][:, 0:8].astype(bf16)          # (R, 8); lanes 6,7 zero
    span = (pooled_w + 2) * tb
    parts = []
    for kh in range(k):                               # 5 independent accumulators
        part = None
        for kw in range(k):
            r = (kh * pooled_w + kw) * tb
            t = kh * k + kw
            d = jnp.dot(p1[r:r + span, :], w2_ref[8 * t:8 * (t + 1), :],
                        preferred_element_type=f32)   # (span, 128)
            part = d if part is None else part + d
        parts.append(part)
    while len(parts) > 1:                              # tree-sum the partials
        parts = [parts[i] + parts[i + 1] if i + 1 < len(parts) else parts[i]
                 for i in range(0, len(parts), 2)]
    acc = parts[0]
    h = jnp.maximum(jnp.maximum(acc[0:tb], acc[tb:2 * tb]),
                    jnp.maximum(acc[pooled_w * tb:(pooled_w + 1) * tb],
                                acc[(pooled_w + 1) * tb:(pooled_w + 2) * tb]))
    h = jnp.maximum(h + b2_ref[...], 0.0)   # 2nd ReLU of the module is a no-op

    # --- fc1 -> fc2 -> fc3 (flatten == first 16 lanes; padded lanes stay 0) --
    h = jnp.maximum(jnp.dot(h.astype(bf16), wf1_ref[...],
                            preferred_element_type=f32) + bf1_ref[...], 0.0)
    h = jnp.maximum(jnp.dot(h.astype(bf16), wf2_ref[...],
                            preferred_element_type=f32) + bf2_ref[...], 0.0)
    out_ref[...] = jnp.dot(h.astype(bf16), wf3_ref[...],
                           preferred_element_type=f32) + bf3_ref[...]


# ----------------------------------------------------------------------------
# Host-side wrapper (layout glue on inputs/weights only)
# ----------------------------------------------------------------------------
def _pad2d(a, rows, cols):
    return jnp.pad(a, ((0, rows - a.shape[0]), (0, cols - a.shape[1])))


def _pad_bias(b):
    return jnp.pad(b, (0, LANES - b.shape[0])).reshape(1, LANES)


def lenet_forward(x, params, *, num_classes=10, batch_tile=128):
    """Fused LeNet forward. x: (N, C, H, W) float32 -> (N, num_classes)."""
    N, C, H, W = x.shape
    K = 5
    OH1, OW1 = H - K + 1, W - K + 1
    PH, PW = OH1 // 2, OW1 // 2               # pool1 output spatial (6, 6)
    K1 = C * K * K
    # Fused kernel targets the configuration where conv2's output is the single
    # 2x2 pool2 window (flatten length == 16), e.g. 16x16 inputs.
    assert PH - K + 1 == 2 and PW - K + 1 == 2, "fused kernel expects 16x16 input"
    assert K1 <= LANES and params["wf1"].shape[0] == 16

    # Batch tile (multiple of 8, or the whole batch).
    tb = N if N <= batch_tile else batch_tile
    if N % tb:
        tb = N
    assert tb == N or tb % 8 == 0
    nb = N // tb

    bf16 = jnp.bfloat16

    # conv1 im2col, batch-tile leading, pool-window offset next (XLA glue):
    # row within a tile = ((di*2+dj)*PH*PW + i*PW + j)*tb + n_local
    # TODO(synk): for large batches on v5e, build conv1 in-kernel from the raw
    # image instead of this 4x-replicated host-side im2col.
    slices = [x[:, :, kh:kh + OH1, kw:kw + OW1]
              for kh in range(K) for kw in range(K)]
    p = jnp.stack(slices, axis=2)                     # (N, C, 25, OH1, OW1)
    p = p[:, :, :, :2 * PH, :2 * PW]                  # floor crop (PyTorch pool)
    p = p.reshape(nb, tb, C, K * K, PH, 2, PW, 2)     # (nb,nl,c,kk,i,di,j,dj)
    p = p.transpose(0, 5, 7, 4, 6, 1, 2, 3)           # (nb,di,dj,i,j,nl,c,kk)
    p = p.reshape(nb, 4 * PH * PW * tb, K1)
    p = jnp.pad(p, ((0, 0), (0, 0), (0, LANES - K1))).astype(bf16)

    # Weights: bf16, lane-dense; conv2 compact (25*8, 128) instead of padded 3-D.
    oc1 = params["w1"].shape[0]                       # 6
    oc2 = params["w2"].shape[0]                       # 16
    w1p = _pad2d(params["w1"].reshape(oc1, K1).T, LANES, LANES).astype(bf16)
    b1p = _pad_bias(params["b1"])
    w2m = params["w2"].transpose(2, 3, 1, 0).reshape(K * K, oc1, oc2)
    w2p = jnp.pad(w2m, ((0, 0), (0, 8 - oc1), (0, LANES - oc2)))
    w2p = w2p.reshape(K * K * 8, LANES).astype(bf16)
    b2p = _pad_bias(params["b2"])
    wf1p = _pad2d(params["wf1"], LANES, LANES).astype(bf16)
    bf1p = _pad_bias(params["bf1"])
    wf2p = _pad2d(params["wf2"], LANES, LANES).astype(bf16)
    bf2p = _pad_bias(params["bf2"])
    wf3p = _pad2d(params["wf3"], LANES, LANES).astype(bf16)
    bf3p = _pad_bias(params["bf3"])

    kernel = functools.partial(_lenet_kernel, tb=tb, pooled_w=PW, k=K)
    const = lambda shape: pl.BlockSpec(shape, lambda b: (0,) * len(shape))
    out = pl.pallas_call(
        kernel,
        out_shape=jax.ShapeDtypeStruct((N, LANES), jnp.float32),
        grid=(nb,),
        in_specs=[
            pl.BlockSpec((1, 4 * PH * PW * tb, LANES), lambda b: (b, 0, 0)),
            const((LANES, LANES)), const((1, LANES)),           # w1, b1
            const((K * K * 8, LANES)), const((1, LANES)),       # w2, b2 (compact)
            const((LANES, LANES)), const((1, LANES)),           # fc1
            const((LANES, LANES)), const((1, LANES)),           # fc2
            const((LANES, LANES)), const((1, LANES)),           # fc3
        ],
        out_specs=pl.BlockSpec((tb, LANES), lambda b: (b, 0)),
        scratch_shapes=[pltpu.VMEM((PH * PW * tb, LANES), jnp.float32)],
        compiler_params=pltpu.CompilerParams(
            dimension_semantics=("parallel",)),
    )(p, w1p, b1p, w2p, b2p, wf1p, bf1p, wf2p, bf2p, wf3p, bf3p)
    return out[:, :num_classes]


# ----------------------------------------------------------------------------
# Pure-JAX reference (for correctness check)
# ----------------------------------------------------------------------------
def lenet_reference(x, params):
    hi = jax.lax.Precision.HIGHEST

    def conv(z, w, b):
        y = jax.lax.conv_general_dilated(
            z, w, window_strides=(1, 1), padding="VALID",
            dimension_numbers=("NCHW", "OIHW", "NCHW"), precision=hi)
        return jax.nn.relu(y + b[None, :, None, None])

    def pool(z):
        return jax.lax.reduce_window(z, -jnp.inf, jax.lax.max,
                                     (1, 1, 2, 2), (1, 1, 2, 2), "VALID")

    y = pool(conv(x, params["w1"], params["b1"]))
    y = jax.nn.relu(pool(conv(y, params["w2"], params["b2"])))
    y = y.reshape(y.shape[0], -1)
    y = jax.nn.relu(jnp.dot(y, params["wf1"], precision=hi) + params["bf1"])
    y = jax.nn.relu(jnp.dot(y, params["wf2"], precision=hi) + params["bf2"])
    return jnp.dot(y, params["wf3"], precision=hi) + params["bf3"]


def init_params(key, input_nc=3, num_classes=10, flatten_num=16):
    ks = jax.random.split(key, 10)
    s = 0.1
    return {
        "w1": s * jax.random.normal(ks[0], (6, input_nc, 5, 5), jnp.float32),
        "b1": s * jax.random.normal(ks[1], (6,), jnp.float32),
        "w2": s * jax.random.normal(ks[2], (16, 6, 5, 5), jnp.float32),
        "b2": s * jax.random.normal(ks[3], (16,), jnp.float32),
        "wf1": s * jax.random.normal(ks[4], (flatten_num, 120), jnp.float32),
        "bf1": s * jax.random.normal(ks[5], (120,), jnp.float32),
        "wf2": s * jax.random.normal(ks[6], (120, 84), jnp.float32),
        "bf2": s * jax.random.normal(ks[7], (84,), jnp.float32),
        "wf3": s * jax.random.normal(ks[8], (84, num_classes), jnp.float32),
        "bf3": s * jax.random.normal(ks[9], (num_classes,), jnp.float32),
    }


if __name__ == "__main__":
    key = jax.random.PRNGKey(0)
    k_x, k_p = jax.random.split(key)
    # 16x16 input: conv1 12x12 -> pool 6x6 -> conv2 2x2 -> pool 1x1 => flatten=16
    x = jax.random.normal(k_x, (2, 3, 16, 16), jnp.float32)
    params = init_params(k_p, input_nc=3, num_classes=10, flatten_num=16)

    fwd = jax.jit(lenet_forward)
    out = fwd(x, params)
    jax.block_until_ready(out)
    assert out.shape == (2, 10) and out.dtype == jnp.float32

    ref = jax.jit(lenet_reference)(x, params)
    # Tolerance widened slightly vs the all-f32 version: matmul operands are
    # bf16 (per perf review); accumulation and elementwise math remain f32.
    assert np.allclose(np.asarray(out), np.asarray(ref), rtol=2e-2, atol=2e-2), \
        "fused Pallas kernel does not match pure-JAX reference"
    print("KERNEL_OK")
</pallas_src>

<mosaic_0001>
module attributes {stable_mosaic.version = 11 : i64} {
  func.func @_lenet_kernel(%arg0: i32, %arg1: memref<1x288x128xbf16, #tpu.memory_space<vmem>>, %arg2: memref<128x128xbf16, #tpu.memory_space<vmem>>, %arg3: memref<1x128xf32, #tpu.memory_space<vmem>>, %arg4: memref<200x128xbf16, #tpu.memory_space<vmem>>, %arg5: memref<1x128xf32, #tpu.memory_space<vmem>>, %arg6: memref<128x128xbf16, #tpu.memory_space<vmem>>, %arg7: memref<1x128xf32, #tpu.memory_space<vmem>>, %arg8: memref<128x128xbf16, #tpu.memory_space<vmem>>, %arg9: memref<1x128xf32, #tpu.memory_space<vmem>>, %arg10: memref<128x128xbf16, #tpu.memory_space<vmem>>, %arg11: memref<1x128xf32, #tpu.memory_space<vmem>>, %arg12: memref<2x128xf32, #tpu.memory_space<vmem>>, %arg13: memref<72x128xf32, #tpu.memory_space<vmem>>) attributes {dimension_semantics = [#tpu.dimension_semantics<parallel>], iteration_bounds = array<i64: 1>, scalar_prefetch = 0 : i64, scratch_operands = 1 : i64, tpu.core_type = #tpu.core_type<tc>, window_params = [{transform_indices = @transform_0, window_bounds = array<i64: 1, 288, 128>}, {pipeline_mode = #tpu.pipeline_mode<synchronous>, transform_indices = @transform_1, window_bounds = array<i64: 128, 128>}, {pipeline_mode = #tpu.pipeline_mode<synchronous>, transform_indices = @transform_2, window_bounds = array<i64: 1, 128>}, {pipeline_mode = #tpu.pipeline_mode<synchronous>, transform_indices = @transform_3, window_bounds = array<i64: 200, 128>}, {pipeline_mode = #tpu.pipeline_mode<synchronous>, transform_indices = @transform_4, window_bounds = array<i64: 1, 128>}, {pipeline_mode = #tpu.pipeline_mode<synchronous>, transform_indices = @transform_5, window_bounds = array<i64: 128, 128>}, {pipeline_mode = #tpu.pipeline_mode<synchronous>, transform_indices = @transform_6, window_bounds = array<i64: 1, 128>}, {pipeline_mode = #tpu.pipeline_mode<synchronous>, transform_indices = @transform_7, window_bounds = array<i64: 128, 128>}, {pipeline_mode = #tpu.pipeline_mode<synchronous>, transform_indices = @transform_8, window_bounds = array<i64: 1, 128>}, {pipeline_mode = #tpu.pipeline_mode<synchronous>, transform_indices = @transform_9, window_bounds = array<i64: 128, 128>}, {pipeline_mode = #tpu.pipeline_mode<synchronous>, transform_indices = @transform_10, window_bounds = array<i64: 1, 128>}, {transform_indices = @transform_11, window_bounds = array<i64: 2, 128>}]} {
    %c0 = arith.constant 0 : index
    %c0_0 = arith.constant 0 : index
    %c0_1 = arith.constant 0 : index
    %0 = vector.load %arg1[%c0, %c0_0, %c0_1] : memref<1x288x128xbf16, #tpu.memory_space<vmem>>, vector<1x288x128xbf16>
    %1 = vector.shape_cast %0 : vector<1x288x128xbf16> to vector<288x128xbf16>
    %c0_2 = arith.constant 0 : index
    %c0_3 = arith.constant 0 : index
    %2 = vector.load %arg2[%c0_2, %c0_3] : memref<128x128xbf16, #tpu.memory_space<vmem>>, vector<128x128xbf16>
    %cst = arith.constant dense<0.000000e+00> : vector<288x128xf32>
    %3 = tpu.matmul %1, %2, %cst {dimension_numbers = #tpu.dot_dimension_numbers<[1], [0], [0], [1], [0, 0, 1, 1], [], []>} : vector<288x128xbf16>, vector<128x128xbf16>, vector<288x128xf32> -> vector<288x128xf32>
    %4 = vector.extract_strided_slice %3 {offsets = [0, 0], sizes = [72, 128], strides = [1, 1]} : vector<288x128xf32> to vector<72x128xf32>
    %5 = vector.extract_strided_slice %3 {offsets = [72, 0], sizes = [72, 128], strides = [1, 1]} : vector<288x128xf32> to vector<72x128xf32>
    %6 = arith.maximumf %4, %5 : vector<72x128xf32>
    %7 = vector.extract_strided_slice %3 {offsets = [144, 0], sizes = [72, 128], strides = [1, 1]} : vector<288x128xf32> to vector<72x128xf32>
    %8 = vector.extract_strided_slice %3 {offsets = [216, 0], sizes = [72, 128], strides = [1, 1]} : vector<288x128xf32> to vector<72x128xf32>
    %9 = arith.maximumf %7, %8 : vector<72x128xf32>
    %10 = arith.maximumf %6, %9 : vector<72x128xf32>
    %c0_4 = arith.constant 0 : index
    %c0_5 = arith.constant 0 : index
    %11 = vector.load %arg3[%c0_4, %c0_5] : memref<1x128xf32, #tpu.memory_space<vmem>>, vector<1x128xf32>
    %12 = vector.broadcast %11 : vector<1x128xf32> to vector<72x128xf32>
    %13 = arith.addf %10, %12 : vector<72x128xf32>
    %cst_6 = arith.constant 0.000000e+00 : f32
    %14 = vector.broadcast %cst_6 : f32 to vector<72x128xf32>
    %15 = arith.maximumf %13, %14 : vector<72x128xf32>
    %c0_7 = arith.constant 0 : index
    %c0_8 = arith.constant 0 : index
    %16 = vector.load %arg13[%c0_7, %c0_8] : memref<72x128xf32, #tpu.memory_space<vmem>>, vector<72x128xf32>
    tpu.vector_store %arg13[%c0_7, %c0_8], %15 {strides = array<i32>} : memref<72x128xf32, #tpu.memory_space<vmem>>, vector<72x128xf32>,
    %c0_9 = arith.constant 0 : index
    %c0_10 = arith.constant 0 : index
    %17 = vector.load %arg13[%c0_9, %c0_10] : memref<72x128xf32, #tpu.memory_space<vmem>>, vector<72x128xf32>
    %18 = vector.extract_strided_slice %17 {offsets = [0, 0], sizes = [72, 8], strides = [1, 1]} : vector<72x128xf32> to vector<72x8xf32>
    %19 = arith.truncf %18 : vector<72x8xf32> to vector<72x8xbf16>
    %20 = vector.extract_strided_slice %19 {offsets = [0, 0], sizes = [16, 8], strides = [1, 1]} : vector<72x8xbf16> to vector<16x8xbf16>
    %c0_11 = arith.constant 0 : index
    %c0_12 = arith.constant 0 : index
    %21 = vector.load %arg4[%c0_11, %c0_12] : memref<200x128xbf16, #tpu.memory_space<vmem>>, vector<8x128xbf16>
    %cst_13 = arith.constant dense<0.000000e+00> : vector<16x128xf32>
    %22 = tpu.matmul %20, %21, %cst_13 {dimension_numbers = #tpu.dot_dimension_numbers<[1], [0], [0], [1], [0, 0, 1, 1], [], []>} : vector<16x8xbf16>, vector<8x128xbf16>, vector<16x128xf32> -> vector<16x128xf32>
    %23 = vector.extract_strided_slice %19 {offsets = [2, 0], sizes = [16, 8], strides = [1, 1]} : vector<72x8xbf16> to vector<16x8xbf16>
    %c8 = arith.constant 8 : index
    %c0_14 = arith.constant 0 : index
    %24 = vector.load %arg4[%c8, %c0_14] : memref<200x128xbf16, #tpu.memory_space<vmem>>, vector<8x128xbf16>
    %cst_15 = arith.constant dense<0.000000e+00> : vector<16x128xf32>
    %25 = tpu.matmul %23, %24, %cst_15 {dimension_numbers = #tpu.dot_dimension_numbers<[1], [0], [0], [1], [0, 0, 1, 1], [], []>} : vector<16x8xbf16>, vector<8x128xbf16>, vector<16x128xf32> -> vector<16x128xf32>
    %26 = arith.addf %22, %25 : vector<16x128xf32>
    %27 = vector.extract_strided_slice %19 {offsets = [4, 0], sizes = [16, 8], strides = [1, 1]} : vector<72x8xbf16> to vector<16x8xbf16>
    %c16 = arith.constant 16 : index
    %c0_16 = arith.constant 0 : index
    %28 = vector.load %arg4[%c16, %c0_16] : memref<200x128xbf16, #tpu.memory_space<vmem>>, vector<8x128xbf16>
    %cst_17 = arith.constant dense<0.000000e+00> : vector<16x128xf32>
    %29 = tpu.matmul %27, %28, %cst_17 {dimension_numbers = #tpu.dot_dimension_numbers<[1], [0], [0], [1], [0, 0, 1, 1], [], []>} : vector<16x8xbf16>, vector<8x128xbf16>, vector<16x128xf32> -> vector<16x128xf32>
    %30 = arith.addf %26, %29 : vector<16x128xf32>
    %31 = vector.extract_strided_slice %19 {offsets = [6, 0], sizes = [16, 8], strides = [1, 1]} : vector<72x8xbf16> to vector<16x8xbf16>
    %c24 = arith.constant 24 : index
    %c0_18 = arith.constant 0 : index
    %32 = vector.load %arg4[%c24, %c0_18] : memref<200x128xbf16, #tpu.memory_space<vmem>>, vector<8x128xbf16>
    %cst_19 = arith.constant dense<0.000000e+00> : vector<16x128xf32>
    %33 = tpu.matmul %31, %32, %cst_19 {dimension_numbers = #tpu.dot_dimension_numbers<[1], [0], [0], [1], [0, 0, 1, 1], [], []>} : vector<16x8xbf16>, vector<8x128xbf16>, vector<16x128xf32> -> vector<16x128xf32>
    %34 = arith.addf %30, %33 : vector<16x128xf32>
    %35 = vector.extract_strided_slice %19 {offsets = [8, 0], sizes = [16, 8], strides = [1, 1]} : vector<72x8xbf16> to vector<16x8xbf16>
    %c32 = arith.constant 32 : index
    %c0_20 = arith.constant 0 : index
    %36 = vector.load %arg4[%c32, %c0_20] : memref<200x128xbf16, #tpu.memory_space<vmem>>, vector<8x128xbf16>
    %cst_21 = arith.constant dense<0.000000e+00> : vector<16x128xf32>
    %37 = tpu.matmul %35, %36, %cst_21 {dimension_numbers = #tpu.dot_dimension_numbers<[1], [0], [0], [1], [0, 0, 1, 1], [], []>} : vector<16x8xbf16>, vector<8x128xbf16>, vector<16x128xf32> -> vector<16x128xf32>
    %38 = arith.addf %34, %37 : vector<16x128xf32>
    %39 = vector.extract_strided_slice %19 {offsets = [12, 0], sizes = [16, 8], strides = [1, 1]} : vector<72x8xbf16> to vector<16x8xbf16>
    %c40 = arith.constant 40 : index
    %c0_22 = arith.constant 0 : index
    %40 = vector.load %arg4[%c40, %c0_22] : memref<200x128xbf16, #tpu.memory_space<vmem>>, vector<8x128xbf16>
    %cst_23 = arith.constant dense<0.000000e+00> : vector<16x128xf32>
    %41 = tpu.matmul %39, %40, %cst_23 {dimension_numbers = #tpu.dot_dimension_numbers<[1], [0], [0], [1], [0, 0, 1, 1], [], []>} : vector<16x8xbf16>, vector<8x128xbf16>, vector<16x128xf32> -> vector<16x128xf32>
    %42 = vector.extract_strided_slice %19 {offsets = [14, 0], sizes = [16, 8], strides = [1, 1]} : vector<72x8xbf16> to vector<16x8xbf16>
    %c48 = arith.constant 48 : index
    %c0_24 = arith.constant 0 : index
    %43 = vector.load %arg4[%c48, %c0_24] : memref<200x128xbf16, #tpu.memory_space<vmem>>, vector<8x128xbf16>
    %cst_25 = arith.constant dense<0.000000e+00> : vector<16x128xf32>
    %44 = tpu.matmul %42, %43, %cst_25 {dimension_numbers = #tpu.dot_dimension_numbers<[1], [0], [0], [1], [0, 0, 1, 1], [], []>} : vector<16x8xbf16>, vector<8x128xbf16>, vector<16x128xf32> -> vector<16x128xf32>
    %45 = arith.addf %41, %44 : vector<16x128xf32>
    %46 = vector.extract_strided_slice %19 {offsets = [16, 0], sizes = [16, 8], strides = [1, 1]} : vector<72x8xbf16> to vector<16x8xbf16>
    %c56 = arith.constant 56 : index
    %c0_26 = arith.constant 0 : index
    %47 = vector.load %arg4[%c56, %c0_26] : memref<200x128xbf16, #tpu.memory_space<vmem>>, vector<8x128xbf16>
    %cst_27 = arith.constant dense<0.000000e+00> : vector<16x128xf32>
    %48 = tpu.matmul %46, %47, %cst_27 {dimension_numbers = #tpu.dot_dimension_numbers<[1], [0], [0], [1], [0, 0, 1, 1], [], []>} : vector<16x8xbf16>, vector<8x128xbf16>, vector<16x128xf32> -> vector<16x128xf32>
    %49 = arith.addf %45, %48 : vector<16x128xf32>
    %50 = vector.extract_strided_slice %19 {offsets = [18, 0], sizes = [16, 8], strides = [1, 1]} : vector<72x8xbf16> to vector<16x8xbf16>
    %c64 = arith.constant 64 : index
    %c0_28 = arith.constant 0 : index
    %51 = vector.load %arg4[%c64, %c0_28] : memref<200x128xbf16, #tpu.memory_space<vmem>>, vector<8x128xbf16>
    %cst_29 = arith.constant dense<0.000000e+00> : vector<16x128xf32>
    %52 = tpu.matmul %50, %51, %cst_29 {dimension_numbers = #tpu.dot_dimension_numbers<[1], [0], [0], [1], [0, 0, 1, 1], [], []>} : vector<16x8xbf16>, vector<8x128xbf16>, vector<16x128xf32> -> vector<16x128xf32>
    %53 = arith.addf %49, %52 : vector<16x128xf32>
    %54 = vector.extract_strided_slice %19 {offsets = [20, 0], sizes = [16, 8], strides = [1, 1]} : vector<72x8xbf16> to vector<16x8xbf16>
    %c72 = arith.constant 72 : index
    %c0_30 = arith.constant 0 : index
    %55 = vector.load %arg4[%c72, %c0_30] : memref<200x128xbf16, #tpu.memory_space<vmem>>, vector<8x128xbf16>
    %cst_31 = arith.constant dense<0.000000e+00> : vector<16x128xf32>
    %56 = tpu.matmul %54, %55, %cst_31 {dimension_numbers = #tpu.dot_dimension_numbers<[1], [0], [0], [1], [0, 0, 1, 1], [], []>} : vector<16x8xbf16>, vector<8x128xbf16>, vector<16x128xf32> -> vector<16x128xf32>
    %57 = arith.addf %53, %56 : vector<16x128xf32>
    %58 = vector.extract_strided_slice %19 {offsets = [24, 0], sizes = [16, 8], strides = [1, 1]} : vector<72x8xbf16> to vector<16x8xbf16>
    %c80 = arith.constant 80 : index
    %c0_32 = arith.constant 0 : index
    %59 = vector.load %arg4[%c80, %c0_32] : memref<200x128xbf16, #tpu.memory_space<vmem>>, vector<8x128xbf16>
    %cst_33 = arith.constant dense<0.000000e+00> : vector<16x128xf32>
    %60 = tpu.matmul %58, %59, %cst_33 {dimension_numbers = #tpu.dot_dimension_numbers<[1], [0], [0], [1], [0, 0, 1, 1], [], []>} : vector<16x8xbf16>, vector<8x128xbf16>, vector<16x128xf32> -> vector<16x128xf32>
    %61 = vector.extract_strided_slice %19 {offsets = [26, 0], sizes = [16, 8], strides = [1, 1]} : vector<72x8xbf16> to vector<16x8xbf16>
    %c88 = arith.constant 88 : index
    %c0_34 = arith.constant 0 : index
    %62 = vector.load %arg4[%c88, %c0_34] : memref<200x128xbf16, #tpu.memory_space<vmem>>, vector<8x128xbf16>
    %cst_35 = arith.constant dense<0.000000e+00> : vector<16x128xf32>
    %63 = tpu.matmul %61, %62, %cst_35 {dimension_numbers = #tpu.dot_dimension_numbers<[1], [0], [0], [1], [0, 0, 1, 1], [], []>} : vector<16x8xbf16>, vector<8x128xbf16>, vector<16x128xf32> -> vector<16x128xf32>
    %64 = arith.addf %60, %63 : vector<16x128xf32>
    %65 = vector.extract_strided_slice %19 {offsets = [28, 0], sizes = [16, 8], strides = [1, 1]} : vector<72x8xbf16> to vector<16x8xbf16>
    %c96 = arith.constant 96 : index
    %c0_36 = arith.constant 0 : index
    %66 = vector.load %arg4[%c96, %c0_36] : memref<200x128xbf16, #tpu.memory_space<vmem>>, vector<8x128xbf16>
    %cst_37 = arith.constant dense<0.000000e+00> : vector<16x128xf32>
    %67 = tpu.matmul %65, %66, %cst_37 {dimension_numbers = #tpu.dot_dimension_numbers<[1], [0], [0], [1], [0, 0, 1, 1], [], []>} : vector<16x8xbf16>, vector<8x128xbf16>, vector<16x128xf32> -> vector<16x128xf32>
    %68 = arith.addf %64, %67 : vector<16x128xf32>
    %69 = vector.extract_strided_slice %19 {offsets = [30, 0], sizes = [16, 8], strides = [1, 1]} : vector<72x8xbf16> to vector<16x8xbf16>
    %c104 = arith.constant 104 : index
    %c0_38 = arith.constant 0 : index
    %70 = vector.load %arg4[%c104, %c0_38] : memref<200x128xbf16, #tpu.memory_space<vmem>>, vector<8x128xbf16>
    %cst_39 = arith.constant dense<0.000000e+00> : vector<16x128xf32>
    %71 = tpu.matmul %69, %70, %cst_39 {dimension_numbers = #tpu.dot_dimension_numbers<[1], [0], [0], [1], [0, 0, 1, 1], [], []>} : vector<16x8xbf16>, vector<8x128xbf16>, vector<16x128xf32> -> vector<16x128xf32>
    %72 = arith.addf %68, %71 : vector<16x128xf32>
    %73 = vector.extract_strided_slice %19 {offsets = [32, 0], sizes = [16, 8], strides = [1, 1]} : vector<72x8xbf16> to vector<16x8xbf16>
    %c112 = arith.constant 112 : index
    %c0_40 = arith.constant 0 : index
    %74 = vector.load %arg4[%c112, %c0_40] : memref<200x128xbf16, #tpu.memory_space<vmem>>, vector<8x128xbf16>
    %cst_41 = arith.constant dense<0.000000e+00> : vector<16x128xf32>
    %75 = tpu.matmul %73, %74, %cst_41 {dimension_numbers = #tpu.dot_dimension_numbers<[1], [0], [0], [1], [0, 0, 1, 1], [], []>} : vector<16x8xbf16>, vector<8x128xbf16>, vector<16x128xf32> -> vector<16x128xf32>
    %76 = arith.addf %72, %75 : vector<16x128xf32>
    %77 = vector.extract_strided_slice %19 {offsets = [36, 0], sizes = [16, 8], strides = [1, 1]} : vector<72x8xbf16> to vector<16x8xbf16>
    %c120 = arith.constant 120 : index
    %c0_42 = arith.constant 0 : index
    %78 = vector.load %arg4[%c120, %c0_42] : memref<200x128xbf16, #tpu.memory_space<vmem>>, vector<8x128xbf16>
    %cst_43 = arith.constant dense<0.000000e+00> : vector<16x128xf32>
    %79 = tpu.matmul %77, %78, %cst_43 {dimension_numbers = #tpu.dot_dimension_numbers<[1], [0], [0], [1], [0, 0, 1, 1], [], []>} : vector<16x8xbf16>, vector<8x128xbf16>, vector<16x128xf32> -> vector<16x128xf32>
    %80 = vector.extract_strided_slice %19 {offsets = [38, 0], sizes = [16, 8], strides = [1, 1]} : vector<72x8xbf16> to vector<16x8xbf16>
    %c128 = arith.constant 128 : index
    %c0_44 = arith.constant 0 : index
    %81 = vector.load %arg4[%c128, %c0_44] : memref<200x128xbf16, #tpu.memory_space<vmem>>, vector<8x128xbf16>
    %cst_45 = arith.constant dense<0.000000e+00> : vector<16x128xf32>
    %82 = tpu.matmul %80, %81, %cst_45 {dimension_numbers = #tpu.dot_dimension_numbers<[1], [0], [0], [1], [0, 0, 1, 1], [], []>} : vector<16x8xbf16>, vector<8x128xbf16>, vector<16x128xf32> -> vector<16x128xf32>
    %83 = arith.addf %79, %82 : vector<16x128xf32>
    %84 = vector.extract_strided_slice %19 {offsets = [40, 0], sizes = [16, 8], strides = [1, 1]} : vector<72x8xbf16> to vector<16x8xbf16>
    %c136 = arith.constant 136 : index
    %c0_46 = arith.constant 0 : index
    %85 = vector.load %arg4[%c136, %c0_46] : memref<200x128xbf16, #tpu.memory_space<vmem>>, vector<8x128xbf16>
    %cst_47 = arith.constant dense<0.000000e+00> : vector<16x128xf32>
    %86 = tpu.matmul %84, %85, %cst_47 {dimension_numbers = #tpu.dot_dimension_numbers<[1], [0], [0], [1], [0, 0, 1, 1], [], []>} : vector<16x8xbf16>, vector<8x128xbf16>, vector<16x128xf32> -> vector<16x128xf32>
    %87 = arith.addf %83, %86 : vector<16x128xf32>
    %88 = vector.extract_strided_slice %19 {offsets = [42, 0], sizes = [16, 8], strides = [1, 1]} : vector<72x8xbf16> to vector<16x8xbf16>
    %c144 = arith.constant 144 : index
    %c0_48 = arith.constant 0 : index
    %89 = vector.load %arg4[%c144, %c0_48] : memref<200x128xbf16, #tpu.memory_space<vmem>>, vector<8x128xbf16>
    %cst_49 = arith.constant dense<0.000000e+00> : vector<16x128xf32>
    %90 = tpu.matmul %88, %89, %cst_49 {dimension_numbers = #tpu.dot_dimension_numbers<[1], [0], [0], [1], [0, 0, 1, 1], [], []>} : vector<16x8xbf16>, vector<8x128xbf16>, vector<16x128xf32> -> vector<16x128xf32>
    %91 = arith.addf %87, %90 : vector<16x128xf32>
    %92 = vector.extract_strided_slice %19 {offsets = [44, 0], sizes = [16, 8], strides = [1, 1]} : vector<72x8xbf16> to vector<16x8xbf16>
    %c152 = arith.constant 152 : index
    %c0_50 = arith.constant 0 : index
    %93 = vector.load %arg4[%c152, %c0_50] : memref<200x128xbf16, #tpu.memory_space<vmem>>, vector<8x128xbf16>
    %cst_51 = arith.constant dense<0.000000e+00> : vector<16x128xf32>
    %94 = tpu.matmul %92, %93, %cst_51 {dimension_numbers = #tpu.dot_dimension_numbers<[1], [0], [0], [1], [0, 0, 1, 1], [], []>} : vector<16x8xbf16>, vector<8x128xbf16>, vector<16x128xf32> -> vector<16x128xf32>
    %95 = arith.addf %91, %94 : vector<16x128xf32>
    %96 = vector.extract_strided_slice %19 {offsets = [48, 0], sizes = [16, 8], strides = [1, 1]} : vector<72x8xbf16> to vector<16x8xbf16>
    %c160 = arith.constant 160 : index
    %c0_52 = arith.constant 0 : index
    %97 = vector.load %arg4[%c160, %c0_52] : memref<200x128xbf16, #tpu.memory_space<vmem>>, vector<8x128xbf16>
    %cst_53 = arith.constant dense<0.000000e+00> : vector<16x128xf32>
    %98 = tpu.matmul %96, %97, %cst_53 {dimension_numbers = #tpu.dot_dimension_numbers<[1], [0], [0], [1], [0, 0, 1, 1], [], []>} : vector<16x8xbf16>, vector<8x128xbf16>, vector<16x128xf32> -> vector<16x128xf32>
    %99 = vector.extract_strided_slice %19 {offsets = [50, 0], sizes = [16, 8], strides = [1, 1]} : vector<72x8xbf16> to vector<16x8xbf16>
    %c168 = arith.constant 168 : index
    %c0_54 = arith.constant 0 : index
    %100 = vector.load %arg4[%c168, %c0_54] : memref<200x128xbf16, #tpu.memory_space<vmem>>, vector<8x128xbf16>
    %cst_55 = arith.constant dense<0.000000e+00> : vector<16x128xf32>
    %101 = tpu.matmul %99, %100, %cst_55 {dimension_numbers = #tpu.dot_dimension_numbers<[1], [0], [0], [1], [0, 0, 1, 1], [], []>} : vector<16x8xbf16>, vector<8x128xbf16>, vector<16x128xf32> -> vector<16x128xf32>
    %102 = arith.addf %98, %101 : vector<16x128xf32>
    %103 = vector.extract_strided_slice %19 {offsets = [52, 0], sizes = [16, 8], strides = [1, 1]} : vector<72x8xbf16> to vector<16x8xbf16>
    %c176 = arith.constant 176 : index
    %c0_56 = arith.constant 0 : index
    %104 = vector.load %arg4[%c176, %c0_56] : memref<200x128xbf16, #tpu.memory_space<vmem>>, vector<8x128xbf16>
    %cst_57 = arith.constant dense<0.000000e+00> : vector<16x128xf32>
    %105 = tpu.matmul %103, %104, %cst_57 {dimension_numbers = #tpu.dot_dimension_numbers<[1], [0], [0], [1], [0, 0, 1, 1], [], []>} : vector<16x8xbf16>, vector<8x128xbf16>, vector<16x128xf32> -> vector<16x128xf32>
    %106 = arith.addf %102, %105 : vector<16x128xf32>
    %107 = vector.extract_strided_slice %19 {offsets = [54, 0], sizes = [16, 8], strides = [1, 1]} : vector<72x8xbf16> to vector<16x8xbf16>
    %c184 = arith.constant 184 : index
    %c0_58 = arith.constant 0 : index
    %108 = vector.load %arg4[%c184, %c0_58] : memref<200x128xbf16, #tpu.memory_space<vmem>>, vector<8x128xbf16>
    %cst_59 = arith.constant dense<0.000000e+00> : vector<16x128xf32>
    %109 = tpu.matmul %107, %108, %cst_59 {dimension_numbers = #tpu.dot_dimension_numbers<[1], [0], [0], [1], [0, 0, 1, 1], [], []>} : vector<16x8xbf16>, vector<8x128xbf16>, vector<16x128xf32> -> vector<16x128xf32>
    %110 = arith.addf %106, %109 : vector<16x128xf32>
    %111 = vector.extract_strided_slice %19 {offsets = [56, 0], sizes = [16, 8], strides = [1, 1]} : vector<72x8xbf16> to vector<16x8xbf16>
    %c192 = arith.constant 192 : index
    %c0_60 = arith.constant 0 : index
    %112 = vector.load %arg4[%c192, %c0_60] : memref<200x128xbf16, #tpu.memory_space<vmem>>, vector<8x128xbf16>
    %cst_61 = arith.constant dense<0.000000e+00> : vector<16x128xf32>
    %113 = tpu.matmul %111, %112, %cst_61 {dimension_numbers = #tpu.dot_dimension_numbers<[1], [0], [0], [1], [0, 0, 1, 1], [], []>} : vector<16x8xbf16>, vector<8x128xbf16>, vector<16x128xf32> -> vector<16x128xf32>
    %114 = arith.addf %110, %113 : vector<16x128xf32>
    %115 = arith.addf %38, %57 : vector<16x128xf32>
    %116 = arith.addf %76, %95 : vector<16x128xf32>
    %117 = arith.addf %115, %116 : vector<16x128xf32>
    %118 = arith.addf %117, %114 : vector<16x128xf32>
    %119 = vector.extract_strided_slice %118 {offsets = [0, 0], sizes = [2, 128], strides = [1, 1]} : vector<16x128xf32> to vector<2x128xf32>
    %120 = vector.extract_strided_slice %118 {offsets = [2, 0], sizes = [2, 128], strides = [1, 1]} : vector<16x128xf32> to vector<2x128xf32>
    %121 = arith.maximumf %119, %120 : vector<2x128xf32>
    %122 = vector.extract_strided_slice %118 {offsets = [12, 0], sizes = [2, 128], strides = [1, 1]} : vector<16x128xf32> to vector<2x128xf32>
    %123 = vector.extract_strided_slice %118 {offsets = [14, 0], sizes = [2, 128], strides = [1, 1]} : vector<16x128xf32> to vector<2x128xf32>
    %124 = arith.maximumf %122, %123 : vector<2x128xf32>
    %125 = arith.maximumf %121, %124 : vector<2x128xf32>
    %c0_62 = arith.constant 0 : index
    %c0_63 = arith.constant 0 : index
    %126 = vector.load %arg5[%c0_62, %c0_63] : memref<1x128xf32, #tpu.memory_space<vmem>>, vector<1x128xf32>
    %127 = vector.broadcast %126 : vector<1x128xf32> to vector<2x128xf32>
    %128 = arith.addf %125, %127 : vector<2x128xf32>
    %cst_64 = arith.constant 0.000000e+00 : f32
    %129 = vector.broadcast %cst_64 : f32 to vector<2x128xf32>
    %130 = arith.maximumf %128, %129 : vector<2x128xf32>
    %131 = arith.truncf %130 : vector<2x128xf32> to vector<2x128xbf16>
    %c0_65 = arith.constant 0 : index
    %c0_66 = arith.constant 0 : index
    %132 = vector.load %arg6[%c0_65, %c0_66] : memref<128x128xbf16, #tpu.memory_space<vmem>>, vector<128x128xbf16>
    %cst_67 = arith.constant dense<0.000000e+00> : vector<2x128xf32>
    %133 = tpu.matmul %131, %132, %cst_67 {dimension_numbers = #tpu.dot_dimension_numbers<[1], [0], [0], [1], [0, 0, 1, 1], [], []>} : vector<2x128xbf16>, vector<128x128xbf16>, vector<2x128xf32> -> vector<2x128xf32>
    %c0_68 = arith.constant 0 : index
    %c0_69 = arith.constant 0 : index
    %134 = vector.load %arg7[%c0_68, %c0_69] : memref<1x128xf32, #tpu.memory_space<vmem>>, vector<1x128xf32>
    %135 = vector.broadcast %134 : vector<1x128xf32> to vector<2x128xf32>
    %136 = arith.addf %133, %135 : vector<2x128xf32>
    %cst_70 = arith.constant 0.000000e+00 : f32
    %137 = vector.broadcast %cst_70 : f32 to vector<2x128xf32>
    %138 = arith.maximumf %136, %137 : vector<2x128xf32>
    %139 = arith.truncf %138 : vector<2x128xf32> to vector<2x128xbf16>
    %c0_71 = arith.constant 0 : index
    %c0_72 = arith.constant 0 : index
    %140 = vector.load %arg8[%c0_71, %c0_72] : memref<128x128xbf16, #tpu.memory_space<vmem>>, vector<128x128xbf16>
    %cst_73 = arith.constant dense<0.000000e+00> : vector<2x128xf32>
    %141 = tpu.matmul %139, %140, %cst_73 {dimension_numbers = #tpu.dot_dimension_numbers<[1], [0], [0], [1], [0, 0, 1, 1], [], []>} : vector<2x128xbf16>, vector<128x128xbf16>, vector<2x128xf32> -> vector<2x128xf32>
    %c0_74 = arith.constant 0 : index
    %c0_75 = arith.constant 0 : index
    %142 = vector.load %arg9[%c0_74, %c0_75] : memref<1x128xf32, #tpu.memory_space<vmem>>, vector<1x128xf32>
    %143 = vector.broadcast %142 : vector<1x128xf32> to vector<2x128xf32>
    %144 = arith.addf %141, %143 : vector<2x128xf32>
    %cst_76 = arith.constant 0.000000e+00 : f32
    %145 = vector.broadcast %cst_76 : f32 to vector<2x128xf32>
    %146 = arith.maximumf %144, %145 : vector<2x128xf32>
    %147 = arith.truncf %146 : vector<2x128xf32> to vector<2x128xbf16>
    %c0_77 = arith.constant 0 : index
    %c0_78 = arith.constant 0 : index
    %148 = vector.load %arg10[%c0_77, %c0_78] : memref<128x128xbf16, #tpu.memory_space<vmem>>, vector<128x128xbf16>
    %cst_79 = arith.constant dense<0.000000e+00> : vector<2x128xf32>
    %149 = tpu.matmul %147, %148, %cst_79 {dimension_numbers = #tpu.dot_dimension_numbers<[1], [0], [0], [1], [0, 0, 1, 1], [], []>} : vector<2x128xbf16>, vector<128x128xbf16>, vector<2x128xf32> -> vector<2x128xf32>
    %c0_80 = arith.constant 0 : index
    %c0_81 = arith.constant 0 : index
    %150 = vector.load %arg11[%c0_80, %c0_81] : memref<1x128xf32, #tpu.memory_space<vmem>>, vector<1x128xf32>
    %151 = vector.broadcast %150 : vector<1x128xf32> to vector<2x128xf32>
    %152 = arith.addf %149, %151 : vector<2x128xf32>
    %c0_82 = arith.constant 0 : index
    %c0_83 = arith.constant 0 : index
    %153 = vector.load %arg12[%c0_82, %c0_83] : memref<2x128xf32, #tpu.memory_space<vmem>>, vector<2x128xf32>
    tpu.vector_store %arg12[%c0_82, %c0_83], %152 {strides = array<i32>} : memref<2x128xf32, #tpu.memory_space<vmem>>, vector<2x128xf32>,
    return
  }
  func.func @transform_0(%arg0: i32) -> (i32, i32, i32) {
    %c0_i32 = arith.constant 0 : i32
    %c0_i32_0 = arith.constant 0 : i32
    %c0_i32_1 = arith.constant 0 : i32
    return %arg0, %c0_i32, %c0_i32_0 : i32, i32, i32
  }
  func.func @transform_1(%arg0: i32) -> (i32, i32) {
    %c0_i32 = arith.constant 0 : i32
    %c0_i32_0 = arith.constant 0 : i32
    %c0_i32_1 = arith.constant 0 : i32
    return %c0_i32, %c0_i32_0 : i32, i32
  }
  func.func @transform_2(%arg0: i32) -> (i32, i32) {
    %c0_i32 = arith.constant 0 : i32
    %c0_i32_0 = arith.constant 0 : i32
    %c0_i32_1 = arith.constant 0 : i32
    return %c0_i32, %c0_i32_0 : i32, i32
  }
  func.func @transform_3(%arg0: i32) -> (i32, i32) {
    %c0_i32 = arith.constant 0 : i32
    %c0_i32_0 = arith.constant 0 : i32
    %c0_i32_1 = arith.constant 0 : i32
    return %c0_i32, %c0_i32_0 : i32, i32
  }
  func.func @transform_4(%arg0: i32) -> (i32, i32) {
    %c0_i32 = arith.constant 0 : i32
    %c0_i32_0 = arith.constant 0 : i32
    %c0_i32_1 = arith.constant 0 : i32
    return %c0_i32, %c0_i32_0 : i32, i32
  }
  func.func @transform_5(%arg0: i32) -> (i32, i32) {
    %c0_i32 = arith.constant 0 : i32
    %c0_i32_0 = arith.constant 0 : i32
    %c0_i32_1 = arith.constant 0 : i32
    return %c0_i32, %c0_i32_0 : i32, i32
  }
  func.func @transform_6(%arg0: i32) -> (i32, i32) {
    %c0_i32 = arith.constant 0 : i32
    %c0_i32_0 = arith.constant 0 : i32
    %c0_i32_1 = arith.constant 0 : i32
    return %c0_i32, %c0_i32_0 : i32, i32
  }
  func.func @transform_7(%arg0: i32) -> (i32, i32) {
    %c0_i32 = arith.constant 0 : i32
    %c0_i32_0 = arith.constant 0 : i32
    %c0_i32_1 = arith.constant 0 : i32
    return %c0_i32, %c0_i32_0 : i32, i32
  }
  func.func @transform_8(%arg0: i32) -> (i32, i32) {
    %c0_i32 = arith.constant 0 : i32
    %c0_i32_0 = arith.constant 0 : i32
    %c0_i32_1 = arith.constant 0 : i32
    return %c0_i32, %c0_i32_0 : i32, i32
  }
  func.func @transform_9(%arg0: i32) -> (i32, i32) {
    %c0_i32 = arith.constant 0 : i32
    %c0_i32_0 = arith.constant 0 : i32
    %c0_i32_1 = arith.constant 0 : i32
    return %c0_i32, %c0_i32_0 : i32, i32
  }
  func.func @transform_10(%arg0: i32) -> (i32, i32) {
    %c0_i32 = arith.constant 0 : i32
    %c0_i32_0 = arith.constant 0 : i32
    %c0_i32_1 = arith.constant 0 : i32
    return %c0_i32, %c0_i32_0 : i32, i32
  }
  func.func @transform_11(%arg0: i32) -> (i32, i32) {
    %c0_i32 = arith.constant 0 : i32
    %c0_i32_0 = arith.constant 0 : i32
    return %arg0, %c0_i32 : i32, i32
  }
}

</mosaic_0001>

<bundles_post_ra>
// kernel: lenet_forward.1
= control target key start
LH: loop header
LB: loop body
LE: loop exit
PB: predicated region body
PF: predicated region fallthrough
CT: control target
= control target key end

     0   :  { %s3390_s0 = inlined_call_operand.vmem [shape: bf16[1,288,128], index: 0, kind: input, shape index: {}]   ;;  %s3391_s1 = inlined_call_operand.vmem [shape: bf16[128,128], index: 1, kind: input, shape index: {}]   ;;  %s3392_s2 = inlined_call_operand.vmem [shape: f32[1,128], index: 2, kind: input, shape index: {}]   ;;  %s3393_s3 = inlined_call_operand.vmem [shape: bf16[200,128], index: 3, kind: input, shape index: {}]   ;;  %s3394_s4 = inlined_call_operand.vmem [shape: f32[1,128], index: 4, kind: input, shape index: {}]   ;;  %s3395_s5 = inlined_call_operand.vmem [shape: bf16[128,128], index: 5, kind: input, shape index: {}]   ;;  %s3396_s6 = inlined_call_operand.vmem [shape: f32[1,128], index: 6, kind: input, shape index: {}]   ;;  %s3397_s7 = inlined_call_operand.vmem [shape: bf16[128,128], index: 7, kind: input, shape index: {}]   ;;  %s3398_s8 = inlined_call_operand.vmem [shape: f32[1,128], index: 8, kind: input, shape index: {}]   ;;  %s3399_s9 = inlined_call_operand.vmem [shape: bf16[128,128], index: 9, kind: input, shape index: {}]   ;;  %s3400_s10 = inlined_call_operand.vmem [shape: f32[1,128], index: 10, kind: input, shape index: {}]   ;;  %s3401_s11 = inlined_call_operand.hbm [shape: f32[2,128], index: 11, kind: output, shape index: {}]  }
   0x1   :  { %v2721_v0 = vld [vmem:[%s3391_s1] sm:$0xff]   ;;  %v2722_v1 = vld [vmem:[%s3391_s1 + $0x8] sm:$0xff]   ;;  %v2723_v2 = vld [vmem:[%s3391_s1 + $0x10] sm:$0xff]  }
   0x2   :  { %2360 = vmatprep.subr.bf16.mxu0 %v2721_v0  ;;  %v2724_v3 = vld [vmem:[%s3391_s1 + $0x18] sm:$0xff]   ;;  %v2729_v4 = vld [vmem:[%s3390_s0] sm:$0xff]   ;;  %v2726_v6 = vld [vmem:[%s3391_s1 + $0x28] sm:$0xff]  }
   0x3   :  { %2361 = vmatpush3.bf16.msra.mxu0 %v2721_v0  ;;  %2376 = vmatprep.mubr.bf16.mxu0 %v2729_v4  ;;  %v2725_v5 = vld [vmem:[%s3391_s1 + $0x20] sm:$0xff]   ;;  %v2727_v7 = vld [vmem:[%s3391_s1 + $0x30] sm:$0xff]   ;;  %v2728_v8 = vld [vmem:[%s3391_s1 + $0x38] sm:$0xff]  }
   0x4   :  { %2362 = vmatprep.subr.bf16.mxu0 %v2722_v1  ;;  %v2730_v9 = vld [vmem:[%s3390_s0 + $0x8] sm:$0xff]   ;;  %v2731_v10 = vld [vmem:[%s3390_s0 + $0x10] sm:$0xff]   ;;  %v2732_v11 = vld [vmem:[%s3390_s0 + $0x18] sm:$0xff]  }
   0x5   :  { %v2733_v12 = vld [vmem:[%s3390_s0 + $0x20] sm:$0xff]  }
   0x7   :  { %2363 = vmatpush3.bf16.msra.mxu0 %v2722_v1 }
   0x8   :  { %2364 = vmatprep.subr.bf16.mxu0 %v2723_v2 }
   0xb   :  { %2365 = vmatpush3.bf16.msra.mxu0 %v2723_v2 }
   0xc   :  { %2366 = vmatprep.subr.bf16.mxu0 %v2724_v3 }
   0xf   :  { %2367 = vmatpush3.bf16.msra.mxu0 %v2724_v3 }
  0x10   :  { %2368 = vmatprep.subr.bf16.mxu0 %v2725_v5 }
  0x13   :  { %2369 = vmatpush3.bf16.msra.mxu0 %v2725_v5 }
  0x14   :  { %2370 = vmatprep.subr.bf16.mxu0 %v2726_v6 }
  0x17   :  { %2371 = vmatpush3.bf16.msra.mxu0 %v2726_v6 }
  0x18   :  { %2372 = vmatprep.subr.bf16.mxu0 %v2727_v7 }
  0x1b   :  { %2373 = vmatpush3.bf16.msra.mxu0 %v2727_v7 }
  0x1c   :  { %2374 = vmatprep.subr.bf16.mxu0 %v2728_v8 }
  0x1f   :  { %2375 = vmatpush3.bf16.msra.mxu0 %v2728_v8 }
  0x22   :  { %2377 = vmatmul.mubr.bf16.vlgmr.msra.gmra.mrb[0].mxu0 %v2730_v9 }
  0x23   :  { %2380 = vmatprep.mubr.bf16.mxu0 %v2731_v10 }
  0x2a   :  { %2381 = vmatmul.mubr.bf16.gmra.mrb[4].mxu0 %v2732_v11 }
  0x2b   :  { %16 = vsyncpa [#allocation4], 0  ;;  %2384 = vmatprep.mubr.bf16.mxu0 %v2733_v12  ;;  %v2734_v13 = vld [vmem:[%s3390_s0 + $0x28] sm:$0xff]   ;;  %v2735_v14 = vld [vmem:[%s3390_s0 + $0x30] sm:$0xff]   ;;  %vm512_vm0 = vcmask 1043456   ;;  %v2795_v27 = vmov 0.0  }
  0x2c   :  { %v2736_v15 = vld [vmem:[%s3390_s0 + $0x38] sm:$0xff]   ;;  %v2737_v16 = vld [vmem:[%s3390_s0 + $0x40] sm:$0xff]   ;;  %v2738_v17 = vld [vmem:[%s3390_s0 + $0x48] sm:$0xff]   ;;  %2412 = vmatprep.subr.bf16.mxu1 %v2795_v27  ;;  %2562 = vmatprep.subr.bf16.mxu0 %v2795_v27  ;;  %vm2796_vm1 = vmmov 0   ;;  %vm504_vm2 = vcmask 1046528   ;;  %vm508_vm3 = vcmask 64512  }
  0x2d   :  { %v2739_v18 = vld [vmem:[%s3390_s0 + $0x50] sm:$0xff]   ;;  %v2740_v19 = vld [vmem:[%s3390_s0 + $0x58] sm:$0xff]   ;;  %v2741_v20 = vld [vmem:[%s3390_s0 + $0x60] sm:$0xff]   ;;  %2414 = vmatprep.mubr.msk.bf16.mxu1 %vm2796_vm1, %v2795_v27  ;;  %vm605_vm4 = vcmask 1045504   ;;  %vm819_vm5 = vcmask 1041408   ;;  %vm768_vm6 = vcmask 1040384  }
  0x2e   :  { %v2742_v21 = vld [vmem:[%s3390_s0 + $0x68] sm:$0xff]   ;;  %v2743_v22 = vld [vmem:[%s3390_s0 + $0x70] sm:$0xff]   ;;  %v2744_v23 = vld [vmem:[%s3390_s0 + $0x78] sm:$0xff]   ;;  %vm1027_vm7 = vcmask 1042432   ;;  %vm659_vm8 = vcmask 1044480  }
  0x2f   :  { %v2745_v24 = vld [vmem:[%s3390_s0 + $0x80] sm:$0xff]   ;;  %v2746_v25 = vld [vmem:[%s3390_s0 + $0x88] sm:$0xff]  }
  0x30   :  { %v501_v26 = vld [vmem:[%s3393_s3 + $0x4] sm:$0xf]  ;;  %v2203_v5 = vld [vmem:[%s3392_s2] ss:$0 sm:$0xff] }
  0x31   :  { %v514_v28 = vsel %vm512_vm0, %v501_v26, 0 }
  0x32   :  { %2385 = vmatmul.mubr.bf16.gmra.mrb[8].mxu0 %v2734_v13  ;;  %2413 = vmatpush3.bf16.msra.mxu1 %v514_v28 }
  0x33   :  { %2388 = vmatprep.mubr.bf16.mxu0 %v2735_v14  ;;  %2418 = vmatprep.subr.bf16.mxu1 %v2795_v27 }
  0x3a   :  { %2389 = vmatmul.mubr.bf16.gmra.mrb[12].mxu0 %v2736_v15 }
  0x3b   :  { %2392 = vmatprep.mubr.bf16.mxu0 %v2737_v16 }
  0x42   :  { %2393 = vmatmul.mubr.bf16.gmra.mrb[16].mxu0 %v2738_v17 }
  0x43   :  { %2396 = vmatprep.mubr.bf16.mxu0 %v2739_v18 }
  0x4a   :  { %2397 = vmatmul.mubr.bf16.gmra.mrb[20].mxu0 %v2740_v19 }
  0x4b   :  { %2400 = vmatprep.mubr.bf16.mxu0 %v2741_v20 }
  0x52   :  { %2401 = vmatmul.mubr.bf16.gmra.mrb[24].mxu0 %v2742_v21 }
  0x53   :  { %2404 = vmatprep.mubr.bf16.mxu0 %v2743_v22 }
  0x5a   :  { %2405 = vmatmul.mubr.bf16.gmra.mrb[28].mxu0 %v2744_v23 }
  0x5b   :  { %2408 = vmatprep.mubr.bf16.mxu0 %v2745_v24 }
  0x62   :  { %2409 = vmatmul.mubr.bf16.gmra.mrb[32].mxu0 %v2746_v25 }
  0x63   :  { %2578 = vmatprep.mubr.msk.bf16.mxu0 %vm2796_vm1, %v2795_v27 }
  0xf5   :  { %v2378_v29 = vpop.f32.mrb[0].mxu0 }
  0xf6   :  { %v282_v30 = vpop.f32.mrb[1].mxu0 }
  0xf7   :  { %v2379_v31 = vpop.f32.mrb[2].mxu0 }
  0xf8   :  { %v285_v32 = vpop.f32.mrb[3].mxu0 }
  0xfd   :  { %v2947_v33 = vpop.f32.mrb[4].mxu0 }
  0xfe   :  { %v298_v34 = vpop.f32.mrb[5].mxu0 }
  0xff   :  { %v2383_v35 = vpop.f32.mrb[6].mxu0 }
 0x100   :  { %v2949_v36 = vpop.f32.mrb[7].mxu0 }
 0x105   :  { %v2386_v37 = vpop.f32.mrb[8].mxu0 }
 0x106   :  { %v426_v38 = vmax.f32 %v285_v32, %v2386_v37  ;;  %v2951_v39 = vpop.f32.mrb[9].mxu0 }
 0x107   :  { %v2387_v40 = vpop.f32.mrb[10].mxu0 }
 0x108   :  { %v427_v41 = vmax.f32 %v2378_v29, %v2387_v40  ;;  %v317_v42 = vpop.f32.mrb[11].mxu0 }
 0x109   :  { %v425_v43 = vmax.f32 %v282_v30, %v317_v42 }
 0x10d   :  { %v2390_v44 = vpop.f32.mrb[12].mxu0 }
 0x10e   :  { %v430_v45 = vmax.f32 %v2949_v36, %v2390_v44  ;;  %v330_v46 = vpop.f32.mrb[13].mxu0 }
 0x10f   :  { %v428_v47 = vmax.f32 %v2379_v31, %v330_v46  ;;  %v2391_v48 = vpop.f32.mrb[14].mxu0 }
 0x110   :  { %v431_v49 = vmax.f32 %v2947_v33, %v2391_v48  ;;  %v333_v50 = vpop.f32.mrb[15].mxu0 }
 0x111   :  { %v429_v51 = vmax.f32 %v298_v34, %v333_v50 }
 0x115   :  { %v2394_v52 = vpop.f32.mrb[16].mxu0 }
 0x116   :  { %v346_v53 = vpop.f32.mrb[17].mxu0 }
 0x117   :  { %v432_v54 = vmax.f32 %v2383_v35, %v346_v53  ;;  %v2395_v55 = vpop.f32.mrb[18].mxu0 }
 0x118   :  { %v349_v56 = vpop.f32.mrb[19].mxu0 }
 0x119   :  { %v433_v57 = vmax.f32 %v2951_v39, %v349_v56  ;;  %v500_v39 = vld [vmem:[%s3393_s3] sm:$0xf] }
 0x11a   :  { %v561_v48 = vsel %vm512_vm0, %v500_v39, 0 }
 0x11d   :  { %v2398_v58 = vpop.f32.mrb[20].mxu0 }
 0x11e   :  { %v362_v59 = vpop.f32.mrb[21].mxu0 }
 0x11f   :  { %v2399_v60 = vpop.f32.mrb[22].mxu0 }
 0x120   :  { %v365_v61 = vpop.f32.mrb[23].mxu0 }
 0x125   :  { %v2402_v62 = vpop.f32.mrb[24].mxu0 }
 0x126   :  { %v378_v63 = vpop.f32.mrb[25].mxu0 }
 0x127   :  { %v2403_v0 = vpop.f32.mrb[26].mxu0 }
 0x128   :  { %v434_v1 = vmax.f32 %v2394_v52, %v2403_v0  ;;  %v381_v2 = vpop.f32.mrb[27].mxu0 }
 0x12a   :  { %v443_v3 = vmax.f32 %v425_v43, %v434_v1 }
 0x12c   :  { %v459_v13 = vadd.f32 %v2203_v5, %v443_v3  ;;  %v604_v3 = vld [vmem:[%s3393_s3 + $0x8] sm:$0xf] }
 0x12d   :  { %v2406_v4 = vpop.f32.mrb[28].mxu0 }
 0x12e   :  { %v437_v6 = vmax.f32 %v365_v61, %v2406_v4  ;;  %v394_v7 = vpop.f32.mrb[29].mxu0  ;;  %v468_v21 = vmax.f32 %v459_v13, 0.0  ;;  %v613_v13 = vsel %vm512_vm0, %v604_v3, 0 }
 0x12f   :  { %v435_v8 = vmax.f32 %v2395_v55, %v394_v7  ;;  %v2407_v9 = vpop.f32.mrb[30].mxu0 }
 0x130   :  { %v446_v10 = vmax.f32 %v428_v47, %v437_v6  ;;  %v438_v11 = vmax.f32 %v2398_v58, %v2407_v9  ;;  %v397_v12 = vpop.f32.mrb[31].mxu0 }
 0x131   :  { %v444_v14 = vmax.f32 %v426_v38, %v435_v8  ;;  %v436_v15 = vmax.f32 %v362_v59, %v397_v12 }
 0x132   :  { %v447_v16 = vmax.f32 %v429_v51, %v438_v11  ;;  %v462_v17 = vadd.f32 %v2203_v5, %v446_v10 }
 0x133   :  { %v460_v18 = vadd.f32 %v2203_v5, %v444_v14  ;;  %v445_v19 = vmax.f32 %v427_v41, %v436_v15 }
 0x134   :  { %v463_v20 = vadd.f32 %v2203_v5, %v447_v16  ;;  %v471_v28 = vmax.f32 %v462_v17, 0.0 }
 0x135   :  { %v469_v22 = vmax.f32 %v460_v18, 0.0  ;;  %v461_v23 = vadd.f32 %v2203_v5, %v445_v19  ;;  %v2410_v24 = vpop.f32.mrb[32].mxu0 }
 0x136   :  { %v441_v25 = vmax.f32 %v381_v2, %v2410_v24  ;;  %v410_v26 = vpop.f32.mrb[33].mxu0  ;;  %v472_v50 = vmax.f32 %v463_v20, 0.0 }
 0x137   :  { %v2959_v29 = vpack.c.bf16 %v469_v22, %v468_v21  ;;  %v470_v30 = vmax.f32 %v461_v23, 0.0  ;;  %v439_v31 = vmax.f32 %v2399_v60, %v410_v26  ;;  %v2411_v32 = vpop.f32.mrb[34].mxu0 }
 0x138   :  { %v450_v33 = vmax.f32 %v432_v54, %v441_v25  ;;  %v442_v34 = vmax.f32 %v2402_v62, %v2411_v32  ;;  %v413_v35 = vpop.f32.mrb[35].mxu0  ;;  %v658_v25 = vld [vmem:[%s3393_s3 + $0xc] sm:$0xf]  ;;  %v712_v32 = vld [vmem:[%s3393_s3 + $0x10] sm:$0xf] }
 0x139   :  { %v2961_v36 = vpack.c.bf16 %v471_v28, %v470_v30  ;;  %v448_v37 = vmax.f32 %v430_v45, %v439_v31  ;;  %v440_v38 = vmax.f32 %v378_v63, %v413_v35  ;;  %v505_v44 = vrot.slane %v2959_v29, 1 }
 0x13a   :  { %v466_v40 = vadd.f32 %v2203_v5, %v450_v33  ;;  %v451_v41 = vmax.f32 %v433_v57, %v442_v34  ;;  %v606_v26 = vrot.slane %v2959_v29, 2  ;;  %v667_v28 = vsel %vm512_vm0, %v658_v25, 0  ;;  %v2753_v25 = vld [vmem:[%s3395_s5 + $0x30] sm:$0xff]  }
 0x13b   :  { %v464_v42 = vadd.f32 %v2203_v5, %v448_v37  ;;  %v449_v43 = vmax.f32 %v431_v49, %v440_v38  ;;  %v506_v46 = vrot.slane %v2961_v36, 1  ;;  %v607_v57 = vrot.slane %v2961_v36, 2  ;;  %v767_v38 = vld [vmem:[%s3393_s3 + $0x18] sm:$0xf] }
 0x13c   :  { %v467_v47 = vadd.f32 %v2203_v5, %v451_v41  ;;  %v475_v54 = vmax.f32 %v466_v40, 0.0  ;;  %v821_v61 = vrot.slane %v2961_v36, 6  ;;  %v770_v63 = vrot.slane %v2961_v36, 7 }
 0x13d   :  { %v473_v45 = vmax.f32 %v464_v42, 0.0  ;;  %v465_v51 = vadd.f32 %v2203_v5, %v449_v43  ;;  %v507_v52 = vsel %vm504_vm2, %v505_v44, %v506_v46  ;;  %v608_v30 = vsel %vm605_vm4, %v606_v26, %v607_v57  ;;  %v766_v42 = vld [vmem:[%s3393_s3 + $0x14] sm:$0xf] }
 0x13e   :  { %v476_v53 = vmax.f32 %v467_v47, 0.0  ;;  %2415 = vmatmul.mubr.msk.bf16.vlgmr.msra.gmra.mrb[0].mxu1 %vm508_vm3, %v507_v52  ;;  %v661_v31 = vrot.slane %v2961_v36, 3  ;;  %v660_v33 = vrot.slane %v2959_v29, 3  ;;  %v721_v34 = vsel %vm512_vm0, %v712_v32, 0  ;;  %v870_v47 = vld [vmem:[%s3393_s3 + $0x1c] sm:$0xf] }
 0x13f   :  { %v2971_v55 = vpack.c.bf16 %v473_v45, %v472_v50  ;;  %v474_v56 = vmax.f32 %v465_v51, 0.0  ;;  %2419 = vmatpush3.bf16.msra.mxu1 %v561_v48  ;;  %2420 = vmatprep.mubr.msk.bf16.mxu1 %vm2796_vm1, %v2795_v27  ;;  %v715_v37 = vrot.slane %v2961_v36, 4  ;;  %v714_v39 = vrot.slane %v2959_v29, 4  ;;  %v920_v51 = vld [vmem:[%s3393_s3 + $0x20] sm:$0xf] }
 0x140   :  { %2424 = vmatprep.subr.bf16.mxu1 %v2795_v27  ;;  %v499_v60 = vpack.c.bf16 %v476_v53, %v476_v53  ;;  %v662_v35 = vsel %vm659_vm8, %v660_v33, %v661_v31  ;;  %v776_v40 = vsel %vm512_vm0, %v767_v38, 0  ;;  %v769_v43 = vrot.slane %v2959_v29, 7  ;;  %v973_v52 = vld [vmem:[%s3393_s3 + $0x24] sm:$0xf] }
 0x141   :  { %v2976_v49 = vpack.c.bf16 %v475_v54, %v474_v56  ;;  %v922_v58 = vrot.slane %v2971_v55, 1  ;;  %v974_v59 = vrot.slane %v2971_v55, 2  ;;  %v1128_v62 = vrot.slane %v2971_v55, 6  ;;  %v1026_v54 = vld [vmem:[%s3393_s3 + $0x2c] sm:$0xf] }
 0x142   :  { %v1180_v2 = vrot.slane %v2971_v55, 7  ;;  %v1029_v5 = vrot.slane %v2971_v55, 5  ;;  %v1543_v12 = vrot.slane %v499_v60, 1  ;;  %v1640_v16 = vrot.slane %v499_v60, 2 }
 0x143   :  { %v2985_v0 = vsel %vm504_vm2, %v506_v46, %v922_v58  ;;  %v2988_v1 = vsel %vm605_vm4, %v607_v57, %v974_v59  ;;  %v2997_v4 = vsel %vm819_vm5, %v821_v61, %v1128_v62  ;;  %v1285_v7 = vrot.slane %v2976_v49, 3  ;;  %v1025_v57 = vld [vmem:[%s3393_s3 + $0x28] sm:$0xf] }
 0x144   :  { %v3003_v6 = vsel %vm768_vm6, %v770_v63, %v1180_v2  ;;  %v1334_v8 = vrot.slane %v2976_v49, 2  ;;  %v1436_v9 = vrot.slane %v2976_v49, 5  ;;  %v1488_v10 = vrot.slane %v2976_v49, 6  ;;  %v1231_v2 = vld [vmem:[%s3393_s3 + $0x38] sm:$0xf] }
 0x145   :  { %v1542_v11 = vrot.slane %v2976_v49, 1  ;;  %v1384_v15 = vrot.slane %v2976_v49, 4  ;;  %v1692_v20 = vrot.slane %v499_v60, 3  ;;  %v1744_v22 = vrot.slane %v499_v60, 4 }
 0x146   :  { %v3012_v14 = vsel %vm605_vm4, %v974_v59, %v1334_v8  ;;  %v3018_v17 = vsel %vm1027_vm7, %v1029_v5, %v1436_v9  ;;  %v3021_v18 = vsel %vm819_vm5, %v1128_v62, %v1488_v10  ;;  %v3027_v21 = vsel %vm605_vm4, %v1334_v8, %v1640_v16  ;;  %v1282_v8 = vld [vmem:[%s3393_s3 + $0x40] sm:$0xf]  ;;  %v2749_v9 = vld [vmem:[%s3395_s5 + $0x10] sm:$0xff]   ;;  %v2750_v10 = vld [vmem:[%s3395_s5 + $0x18] sm:$0xff]  }
 0x147   :  { %v3024_v19 = vsel %vm504_vm2, %v1542_v11, %v1543_v12  ;;  %v3034_v23 = vsel %vm659_vm8, %v1285_v7, %v1692_v20  ;;  %v3041_v24 = vsel %vm512_vm0, %v1384_v15, %v1744_v22  ;;  %v716_v41 = vsel %vm512_vm0, %v714_v39, %v715_v37  ;;  %v2751_v11 = vld [vmem:[%s3395_s5 + $0x20] sm:$0xff]   ;;  %v1281_v12 = vld [vmem:[%s3393_s3 + $0x3c] sm:$0xf]  ;;  %v2752_v20 = vld [vmem:[%s3395_s5 + $0x28] sm:$0xff]  }
 0x148   :  { %v827_v44 = vsel %vm512_vm0, %v766_v42, 0  ;;  %v771_v46 = vsel %vm768_vm6, %v769_v43, %v770_v63  ;;  %v820_v48 = vrot.slane %v2959_v29, 6  ;;  %v875_v50 = vsel %vm512_vm0, %v870_v47, 0 }
 0x149   :  { %v980_v53 = vsel %vm512_vm0, %v973_v52, 0  ;;  %v1035_v56 = vsel %vm512_vm0, %v1026_v54, 0  ;;  %v1028_v58 = vrot.slane %v2961_v36, 5  ;;  %v1084_v59 = vsel %vm512_vm0, %v1025_v57, 0  ;;  %v2757_v52 = vld [vmem:[%s3397_s7 + $0x10] sm:$0xff]   ;;  %v2759_v54 = vld [vmem:[%s3397_s7 + $0x20] sm:$0xff]  }
 0x14a   :  { %2421 = vmatmul.mubr.msk.bf16.vlgmr.msra.gmra.mrb[0].mxu1 %vm508_vm3, %v2959_v29  ;;  %v822_v45 = vsel %vm819_vm5, %v820_v48, %v821_v61  ;;  %v928_v29 = vsel %vm512_vm0, %v920_v51, 0  ;;  %v1078_v61 = vrot.slane %v2971_v55, 4  ;;  %v1236_v3 = vsel %vm512_vm0, %v1231_v2, 0  ;;  %v2761_v57 = vld [vmem:[%s3397_s7 + $0x30] sm:$0xff]  }
 0x14b   :  { %2425 = vmatpush3.bf16.msra.mxu1 %v613_v13  ;;  %2426 = vmatprep.mubr.msk.bf16.mxu1 %vm2796_vm1, %v2795_v27  ;;  %v1030_v60 = vsel %vm1027_vm7, %v1028_v58, %v1029_v5  ;;  %v2748_v5 = vld [vmem:[%s3395_s5 + $0x8] sm:$0xff]   ;;  %v1284_v13 = vrot.slane %v2971_v55, 3  ;;  %v1340_v16 = vsel %vm512_vm0, %v1281_v12, 0  ;;  %v2762_v58 = vld [vmem:[%s3397_s7 + $0x38] sm:$0xff]  }
 0x14c   :  { %2430 = vmatprep.subr.bf16.mxu1 %v2795_v27  ;;  %v1079_v63 = vsel %vm512_vm0, %v715_v37, %v1078_v61  ;;  %v1385_v31 = vsel %vm512_vm0, %v1078_v61, %v1384_v15 }
 0x14d   :  { %v1286_v22 = vsel %vm659_vm8, %v1284_v13, %v1285_v7  ;;  %v1383_v7 = vld [vmem:[%s3393_s3 + $0x44] sm:$0xf] }
 0x14e   :  { %v1390_v26 = vsel %vm512_vm0, %v1383_v7, 0 }
 0x156   :  { %2427 = vmatmul.mubr.msk.bf16.vlgmr.msra.gmra.mrb[0].mxu1 %vm508_vm3, %v608_v30 }
 0x157   :  { %2431 = vmatpush3.bf16.msra.mxu1 %v667_v28  ;;  %2432 = vmatprep.mubr.msk.bf16.mxu1 %vm2796_vm1, %v2795_v27  ;;  %v1435_v28 = vld [vmem:[%s3393_s3 + $0x48] sm:$0xf] }
 0x158   :  { %2436 = vmatprep.subr.bf16.mxu1 %v2795_v27  ;;  %v1442_v30 = vsel %vm512_vm0, %v1435_v28, 0 }
 0x162   :  { %2433 = vmatmul.mubr.msk.bf16.vlgmr.msra.gmra.mrb[0].mxu1 %vm508_vm3, %v662_v35 }
 0x163   :  { %2437 = vmatpush3.bf16.msra.mxu1 %v721_v34  ;;  %2438 = vmatprep.mubr.msk.bf16.mxu1 %vm2796_vm1, %v2795_v27 }
 0x164   :  { %2442 = vmatprep.subr.bf16.mxu1 %v2795_v27 }
 0x16e   :  { %2439 = vmatmul.mubr.msk.bf16.vlgmr.msra.gmra.mrb[0].mxu1 %vm508_vm3, %v716_v41 }
 0x16f   :  { %2443 = vmatpush3.bf16.msra.mxu1 %v776_v40  ;;  %2444 = vmatprep.mubr.msk.bf16.mxu1 %vm2796_vm1, %v2795_v27 }
 0x170   :  { %2448 = vmatprep.subr.bf16.mxu1 %v2795_v27 }
 0x17a   :  { %2445 = vmatmul.mubr.msk.bf16.vlgmr.msra.gmra.mrb[0].mxu1 %vm508_vm3, %v771_v46 }
 0x17b   :  { %2449 = vmatpush3.bf16.msra.mxu1 %v827_v44  ;;  %2450 = vmatprep.mubr.msk.bf16.mxu1 %vm2796_vm1, %v2795_v27 }
 0x17c   :  { %2454 = vmatprep.subr.bf16.mxu1 %v2795_v27 }
 0x186   :  { %2451 = vmatmul.mubr.msk.bf16.vlgmr.msra.gmra.mrb[0].mxu1 %vm508_vm3, %v822_v45  ;;  %v2755_v45 = vld [vmem:[%s3397_s7] sm:$0xff]  }
 0x187   :  { %2455 = vmatpush3.bf16.msra.mxu1 %v875_v50  ;;  %2456 = vmatprep.mubr.msk.bf16.mxu1 %vm2796_vm1, %v2795_v27 }
 0x188   :  { %2460 = vmatprep.subr.bf16.mxu1 %v2795_v27 }
 0x192   :  { %2457 = vmatmul.mubr.msk.bf16.vlgmr.msra.gmra.mrb[0].mxu1 %vm508_vm3, %v2961_v36  ;;  %v1127_v36 = vld [vmem:[%s3393_s3 + $0x30] sm:$0xf] }
 0x193   :  { %2461 = vmatpush3.bf16.msra.mxu1 %v928_v29  ;;  %2462 = vmatprep.mubr.msk.bf16.mxu1 %vm2796_vm1, %v2795_v27  ;;  %v1134_v62 = vsel %vm512_vm0, %v1127_v36, 0  ;;  %v2756_v29 = vld [vmem:[%s3397_s7 + $0x8] sm:$0xff]  }
 0x194   :  { %2466 = vmatprep.subr.bf16.mxu1 %v2795_v27 }
 0x19e   :  { %2463 = vmatmul.mubr.msk.bf16.vlgmr.msra.gmra.mrb[0].mxu1 %vm508_vm3, %v2985_v0  ;;  %v1179_v0 = vld [vmem:[%s3393_s3 + $0x34] sm:$0xf] }
 0x19f   :  { %2467 = vmatpush3.bf16.msra.mxu1 %v980_v53  ;;  %2468 = vmatprep.mubr.msk.bf16.mxu1 %vm2796_vm1, %v2795_v27  ;;  %v2758_v53 = vld [vmem:[%s3397_s7 + $0x18] sm:$0xff]  }
 0x1a0   :  { %2472 = vmatprep.subr.bf16.mxu1 %v2795_v27 }
 0x1aa   :  { %2469 = vmatmul.mubr.msk.bf16.vlgmr.msra.gmra.mrb[0].mxu1 %vm508_vm3, %v2988_v1  ;;  %v1186_v1 = vsel %vm512_vm0, %v1179_v0, 0 }
 0x1ab   :  { %2473 = vmatpush3.bf16.msra.mxu1 %v1035_v56  ;;  %2474 = vmatprep.mubr.msk.bf16.mxu1 %vm2796_vm1, %v2795_v27  ;;  %v2760_v56 = vld [vmem:[%s3397_s7 + $0x28] sm:$0xff]  }
 0x1ac   :  { %2478 = vmatprep.subr.bf16.mxu1 %v2795_v27 }
 0x1b6   :  { %2475 = vmatmul.mubr.msk.bf16.vlgmr.msra.gmra.mrb[0].mxu1 %vm508_vm3, %v1030_v60 }
 0x1b7   :  { %2479 = vmatpush3.bf16.msra.mxu1 %v1084_v59  ;;  %2480 = vmatprep.mubr.msk.bf16.mxu1 %vm2796_vm1, %v2795_v27  ;;  %v2230_v59 = vld [vmem:[%s3396_s6] ss:$0 sm:$0xff] }
 0x1b8   :  { %2484 = vmatprep.subr.bf16.mxu1 %v2795_v27 }
 0x1c2   :  { %2481 = vmatmul.mubr.msk.bf16.vlgmr.msra.gmra.mrb[0].mxu1 %vm508_vm3, %v1079_v63 }
 0x1c3   :  { %2485 = vmatpush3.bf16.msra.mxu1 %v1134_v62  ;;  %2486 = vmatprep.mubr.msk.bf16.mxu1 %vm2796_vm1, %v2795_v27 }
 0x1c4   :  { %2490 = vmatprep.subr.bf16.mxu1 %v2795_v27 }
 0x1ce   :  { %2487 = vmatmul.mubr.msk.bf16.vlgmr.msra.gmra.mrb[0].mxu1 %vm508_vm3, %v2997_v4  ;;  %v2747_v4 = vld [vmem:[%s3395_s5] sm:$0xff]  }
 0x1cf   :  { %2491 = vmatpush3.bf16.msra.mxu1 %v1186_v1  ;;  %2492 = vmatprep.mubr.msk.bf16.mxu1 %vm2796_vm1, %v2795_v27  ;;  %v2763_v1 = vld [vmem:[%s3399_s9] sm:$0xff]  }
 0x1d0   :  { %2496 = vmatprep.subr.bf16.mxu1 %v2795_v27  ;;  %2563 = vmatpush3.bf16.msra.mxu0 %v2747_v4  ;;  %v2765_v4 = vld [vmem:[%s3399_s9 + $0x10] sm:$0xff]  }
 0x1d1   :  { %2564 = vmatprep.subr.bf16.mxu0 %v2795_v27 }
 0x1d4   :  { %2565 = vmatpush3.bf16.msra.mxu0 %v2748_v5  ;;  %v2766_v5 = vld [vmem:[%s3399_s9 + $0x18] sm:$0xff]  }
 0x1d5   :  { %2566 = vmatprep.subr.bf16.mxu0 %v2795_v27 }
 0x1d8   :  { %2567 = vmatpush3.bf16.msra.mxu0 %v2749_v9  ;;  %v2769_v9 = vld [vmem:[%s3399_s9 + $0x30] sm:$0xff]  }
 0x1d9   :  { %2568 = vmatprep.subr.bf16.mxu0 %v2795_v27 }
 0x1da   :  { %2493 = vmatmul.mubr.msk.bf16.vlgmr.msra.gmra.mrb[0].mxu1 %vm508_vm3, %v3003_v6  ;;  %v1291_v6 = vsel %vm512_vm0, %v1282_v8, 0  ;;  %v2767_v8 = vld [vmem:[%s3399_s9 + $0x20] sm:$0xff]  }
 0x1db   :  { %2497 = vmatpush3.bf16.msra.mxu1 %v1236_v3  ;;  %2498 = vmatprep.mubr.msk.bf16.mxu1 %vm2796_vm1, %v2795_v27  ;;  %v2764_v3 = vld [vmem:[%s3399_s9 + $0x8] sm:$0xff]  }
 0x1dc   :  { %2502 = vmatprep.subr.bf16.mxu1 %v2795_v27  ;;  %2569 = vmatpush3.bf16.msra.mxu0 %v2750_v10  ;;  %v2770_v10 = vld [vmem:[%s3399_s9 + $0x38] sm:$0xff]  }
 0x1dd   :  { %2570 = vmatprep.subr.bf16.mxu0 %v2795_v27 }
 0x1e0   :  { %2571 = vmatpush3.bf16.msra.mxu0 %v2751_v11  ;;  %v2239_v11 = vld [vmem:[%s3398_s8] ss:$0 sm:$0xff] }
 0x1e1   :  { %2572 = vmatprep.subr.bf16.mxu0 %v2795_v27 }
 0x1e4   :  { %2573 = vmatpush3.bf16.msra.mxu0 %v2752_v20 }
 0x1e5   :  { %2574 = vmatprep.subr.bf16.mxu0 %v2795_v27 }
 0x1e6   :  { %2499 = vmatmul.mubr.msk.bf16.vlgmr.msra.gmra.mrb[0].mxu1 %vm508_vm3, %v2971_v55  ;;  %v1540_v55 = vld [vmem:[%s3393_s3 + $0x54] sm:$0xf] }
 0x1e7   :  { %2503 = vmatpush3.bf16.msra.mxu1 %v1291_v6  ;;  %2504 = vmatprep.mubr.msk.bf16.mxu1 %vm2796_vm1, %v2795_v27  ;;  %v1549_v15 = vsel %vm512_vm0, %v1540_v55, 0  ;;  %v2768_v6 = vld [vmem:[%s3399_s9 + $0x28] sm:$0xff]   ;;  %s2797_s9 = smov [#allocation3]  }
 0x1e8   :  { %2508 = vmatprep.subr.bf16.mxu1 %v2795_v27  ;;  %2575 = vmatpush3.bf16.msra.mxu0 %v2753_v25  ;;  %s2169_s20 = sshll.u32 %s2797_s9, 4  ;;  %s2170_s20 = int_to_ptr.vmem [resolvable:$true] %s2169_s20 }
 0x1e9   :  { %2576 = vmatprep.subr.bf16.mxu0 %v2795_v27  ;;  %s2771_s8 = scalar_lea.vmem %s2170_s20, 32  ;;  %p2776_p1 = scmp.lt.s32.totalorder %s2170_s20, %s2170_s20 }
 0x1ea   :  { %p2772_p0 = scmp.ne.s32.totalorder %s2170_s20, %s2771_s8  ;;  %p2777_p2 = scmp.lt.s32.totalorder %s2771_s8, %s2771_s8 }
 0x1ec   :  { %p2778_p3 = por %p2777_p2, %p2776_p1 }
 0x1ee   :  { %p2779_p4 = pnand %p2778_p3, %p2772_p0 }
 0x1f2   :  { %2505 = vmatmul.mubr.msk.bf16.vlgmr.msra.gmra.mrb[0].mxu1 %vm508_vm3, %v1286_v22 }
 0x1f3   :  { %2509 = vmatpush3.bf16.msra.mxu1 %v1340_v16  ;;  %2510 = vmatprep.mubr.msk.bf16.mxu1 %vm2796_vm1, %v2795_v27 }
 0x1f4   :  { %2514 = vmatprep.subr.bf16.mxu1 %v2795_v27 }
 0x1fe   :  { %2511 = vmatmul.mubr.msk.bf16.vlgmr.msra.gmra.mrb[0].mxu1 %vm508_vm3, %v3012_v14  ;;  %v1487_v14 = vld [vmem:[%s3393_s3 + $0x4c] sm:$0xf] }
 0x1ff   :  { %2515 = vmatpush3.bf16.msra.mxu1 %v1390_v26  ;;  %2516 = vmatprep.mubr.msk.bf16.mxu1 %vm2796_vm1, %v2795_v27  ;;  %v1494_v32 = vsel %vm512_vm0, %v1487_v14, 0  ;;  %v2248_v26 = vld [vmem:[%s3400_s10] ss:$0 sm:$0xff] }
 0x200   :  { %2520 = vmatprep.subr.bf16.mxu1 %v2795_v27 }
 0x20a   :  { %2517 = vmatmul.mubr.msk.bf16.vlgmr.msra.gmra.mrb[0].mxu1 %vm508_vm3, %v1385_v31 }
 0x20b   :  { %2521 = vmatpush3.bf16.msra.mxu1 %v1442_v30  ;;  %2522 = vmatprep.mubr.msk.bf16.mxu1 %vm2796_vm1, %v2795_v27 }
 0x20c   :  { %2526 = vmatprep.subr.bf16.mxu1 %v2795_v27 }
 0x216   :  { %2523 = vmatmul.mubr.msk.bf16.vlgmr.msra.gmra.mrb[0].mxu1 %vm508_vm3, %v3018_v17  ;;  %v1539_v17 = vld [vmem:[%s3393_s3 + $0x50] sm:$0xf] }
 0x217   :  { %2527 = vmatpush3.bf16.msra.mxu1 %v1494_v32  ;;  %2528 = vmatprep.mubr.msk.bf16.mxu1 %vm2796_vm1, %v2795_v27  ;;  %v1596_v33 = vsel %vm512_vm0, %v1539_v17, 0 }
 0x218   :  { %2532 = vmatprep.subr.bf16.mxu1 %v2795_v27 }
 0x222   :  { %2529 = vmatmul.mubr.msk.bf16.vlgmr.msra.gmra.mrb[0].mxu1 %vm508_vm3, %v3021_v18  ;;  %v1639_v18 = vld [vmem:[%s3393_s3 + $0x58] sm:$0xf] }
 0x223   :  { %2533 = vmatpush3.bf16.msra.mxu1 %v1549_v15  ;;  %2534 = vmatprep.mubr.msk.bf16.mxu1 %vm2796_vm1, %v2795_v27  ;;  %v1646_v34 = vsel %vm512_vm0, %v1639_v18, 0 }
 0x224   :  { %2538 = vmatprep.subr.bf16.mxu1 %v2795_v27 }
 0x22e   :  { %2535 = vmatmul.mubr.msk.bf16.vlgmr.msra.gmra.mrb[0].mxu1 %vm508_vm3, %v3024_v19  ;;  %v1691_v19 = vld [vmem:[%s3393_s3 + $0x5c] sm:$0xf] }
 0x22f   :  { %2539 = vmatpush3.bf16.msra.mxu1 %v1596_v33  ;;  %2540 = vmatprep.mubr.msk.bf16.mxu1 %vm2796_vm1, %v2795_v27  ;;  %v1698_v35 = vsel %vm512_vm0, %v1691_v19, 0 }
 0x230   :  { %2544 = vmatprep.subr.bf16.mxu1 %v2795_v27 }
 0x23a   :  { %2541 = vmatmul.mubr.msk.bf16.vlgmr.msra.gmra.mrb[0].mxu1 %vm508_vm3, %v2976_v49  ;;  %v1743_v49 = vld [vmem:[%s3393_s3 + $0x60] sm:$0xf] }
 0x23b   :  { %2545 = vmatpush3.bf16.msra.mxu1 %v1646_v34  ;;  %2546 = vmatprep.mubr.msk.bf16.mxu1 %vm2796_vm1, %v2795_v27  ;;  %v1750_v37 = vsel %vm512_vm0, %v1743_v49, 0 }
 0x23c   :  { %2550 = vmatprep.subr.bf16.mxu1 %v2795_v27 }
 0x246   :  { %2547 = vmatmul.mubr.msk.bf16.vlgmr.msra.gmra.mrb[0].mxu1 %vm508_vm3, %v3027_v21  ;;  %v2754_v21 = vld [vmem:[%s3395_s5 + $0x38] sm:$0xff]  }
 0x247   :  { %2551 = vmatpush3.bf16.msra.mxu1 %v1698_v35  ;;  %2552 = vmatprep.mubr.msk.bf16.mxu1 %vm2796_vm1, %v2795_v27 }
 0x248   :  { %2556 = vmatprep.subr.bf16.mxu1 %v2795_v27  ;;  %2577 = vmatpush3.bf16.msra.mxu0 %v2754_v21 }
 0x249   :  { %2582 = vmatprep.subr.bf16.mxu0 %v2795_v27 }
 0x252   :  { %2553 = vmatmul.mubr.msk.bf16.vlgmr.msra.gmra.mrb[0].mxu1 %vm508_vm3, %v3034_v23 }
 0x253   :  { %2557 = vmatpush3.bf16.msra.mxu1 %v1750_v37  ;;  %2558 = vmatprep.mubr.msk.bf16.mxu1 %vm2796_vm1, %v2795_v27 }
 0x25e   :  { %2559 = vmatmul.mubr.msk.bf16.vlgmr.msra.gmra.mrb[0].mxu1 %vm508_vm3, %v3041_v24  ;;  %v2229_v24 = vld [vmem:[%s3394_s4] ss:$0 sm:$0xff] }
 0x331   :  { %v1786_v38 = vpop.f32.mrb[0].mxu1 }
 0x332   :  { %v2560_v39 = vpop.f32.mrb[1].mxu1  ;;  %v1804_v41 = vrot.slane %v1786_v38, 2 }
 0x333   :  { %v1789_v40 = vpop.f32.mrb[2].mxu1 }
 0x334   :  { %v1808_v42 = vrot.slane %v1789_v40, 2  ;;  %v2561_v23 = vpop.f32.mrb[3].mxu1  ;;  %v1806_v44 = vmax.f32 %v1786_v38, %v1804_v41 }
 0x336   :  { %v1810_v43 = vmax.f32 %v1789_v40, %v1808_v42 }
 0x338   :  { %v1812_v46 = vrot.slane %v1810_v43, 4 }
 0x33a   :  { %v1814_v47 = vmax.f32 %v1806_v44, %v1812_v46 }
 0x33c   :  { %v1822_v48 = vadd.f32 %v2229_v24, %v1814_v47 }
 0x33e   :  { %v1823_v50 = vmax.f32 %v1822_v48, 0.0 }
 0x340   :  { %v1824_v51 = vpack.c.bf16 %v1823_v50, %v1823_v50 }
 0x342   :  { %2579 = vmatmul.mubr.bf16.vlgmr.msra.gmra.mrb[36].mxu0 %v1824_v51 }
 0x343   :  { %2583 = vmatpush3.bf16.msra.mxu0 %v2755_v45  ;;  %2598 = vmatprep.mubr.msk.bf16.mxu0 %vm2796_vm1, %v2795_v27 }
 0x344   :  { %2584 = vmatprep.subr.bf16.mxu0 %v2795_v27 }
 0x347   :  { %2585 = vmatpush3.bf16.msra.mxu0 %v2756_v29 }
 0x348   :  { %2586 = vmatprep.subr.bf16.mxu0 %v2795_v27 }
 0x34b   :  { %2587 = vmatpush3.bf16.msra.mxu0 %v2757_v52 }
 0x34c   :  { %2588 = vmatprep.subr.bf16.mxu0 %v2795_v27 }
 0x34f   :  { %2589 = vmatpush3.bf16.msra.mxu0 %v2758_v53 }
 0x350   :  { %2590 = vmatprep.subr.bf16.mxu0 %v2795_v27 }
 0x353   :  { %2591 = vmatpush3.bf16.msra.mxu0 %v2759_v54 }
 0x354   :  { %2592 = vmatprep.subr.bf16.mxu0 %v2795_v27 }
 0x357   :  { %2593 = vmatpush3.bf16.msra.mxu0 %v2760_v56 }
 0x358   :  { %2594 = vmatprep.subr.bf16.mxu0 %v2795_v27 }
 0x35b   :  { %2595 = vmatpush3.bf16.msra.mxu0 %v2761_v57 }
 0x35c   :  { %2596 = vmatprep.subr.bf16.mxu0 %v2795_v27 }
 0x35f   :  { %2597 = vmatpush3.bf16.msra.mxu0 %v2762_v58 }
 0x360   :  { %2602 = vmatprep.subr.bf16.mxu0 %v2795_v27 }
 0x415   :  { %v1930_v60 = vpop.f32.mrb[36].mxu0 }
 0x416   :  { %v1931_v61 = vadd.f32 %v2230_v59, %v1930_v60  ;;  %v2580_v36 = vpop.f32.mrb[37].mxu0 }
 0x417   :  { %v1933_v62 = vpop.f32.mrb[38].mxu0 }
 0x418   :  { %v1936_v63 = vmax.f32 %v1931_v61, 0.0  ;;  %v2581_v0 = vpop.f32.mrb[39].mxu0 }
 0x41a   :  { %v1937_v2 = vpack.c.bf16 %v1936_v63, %v1936_v63 }
 0x41c   :  { %2599 = vmatmul.mubr.bf16.vlgmr.msra.gmra.mrb[40].mxu0 %v1937_v2 }
 0x41d   :  { %2603 = vmatpush3.bf16.msra.mxu0 %v2763_v1  ;;  %2618 = vmatprep.mubr.msk.bf16.mxu0 %vm2796_vm1, %v2795_v27 }
 0x41e   :  { %2604 = vmatprep.subr.bf16.mxu0 %v2795_v27 }
 0x421   :  { %2605 = vmatpush3.bf16.msra.mxu0 %v2764_v3 }
 0x422   :  { %2606 = vmatprep.subr.bf16.mxu0 %v2795_v27 }
 0x425   :  { %2607 = vmatpush3.bf16.msra.mxu0 %v2765_v4 }
 0x426   :  { %2608 = vmatprep.subr.bf16.mxu0 %v2795_v27 }
 0x429   :  { %2609 = vmatpush3.bf16.msra.mxu0 %v2766_v5 }
 0x42a   :  { %2610 = vmatprep.subr.bf16.mxu0 %v2795_v27 }
 0x42d   :  { %2611 = vmatpush3.bf16.msra.mxu0 %v2767_v8 }
 0x42e   :  { %2612 = vmatprep.subr.bf16.mxu0 %v2795_v27 }
 0x431   :  { %2613 = vmatpush3.bf16.msra.mxu0 %v2768_v6 }
 0x432   :  { %2614 = vmatprep.subr.bf16.mxu0 %v2795_v27 }
 0x435   :  { %2615 = vmatpush3.bf16.msra.mxu0 %v2769_v9 }
 0x436   :  { %2616 = vmatprep.subr.bf16.mxu0 %v2795_v27 }
 0x439   :  { %2617 = vmatpush3.bf16.msra.mxu0 %v2770_v10 }
 0x4ef   :  { %v2043_v12 = vpop.f32.mrb[40].mxu0 }
 0x4f0   :  { %v2044_v13 = vadd.f32 %v2239_v11, %v2043_v12  ;;  %v2600_v16 = vpop.f32.mrb[41].mxu0 }
 0x4f1   :  { %v2046_v20 = vpop.f32.mrb[42].mxu0 }
 0x4f2   :  { %v2049_v22 = vmax.f32 %v2044_v13, 0.0  ;;  %v2601_v25 = vpop.f32.mrb[43].mxu0 }
 0x4f4   :  { %v2050_v7 = vpack.c.bf16 %v2049_v22, %v2049_v22 }
 0x4f6   :  { %2619 = vmatmul.mubr.bf16.vlgmr.msra.gmra.mrb[44].mxu0 %v2050_v7 }
 0x5c9   :  { %v2156_v27 = vpop.f32.mrb[44].mxu0 }
 0x5ca   :  { %v2157_v28 = vadd.f32 %v2248_v26, %v2156_v27  ;;  %v2620_v30 = vpop.f32.mrb[45].mxu0 }
 0x5cb   :  { %v2159_v31 = vpop.f32.mrb[46].mxu0 }
 0x5cc   :  { %2162 = vst [vmem:[#allocation3] sm:$0x3] %v2157_v28  ;;  %v2621_v14 = vpop.f32.mrb[47].mxu0 }
 0x5cd   :  { %2782 = shalt.err (!%p2779_p4)
}
 0x5ce   :  { %s2783_s10 = scalar_lea.hbm %s3401_s11, 32 }
 0x5cf   :  { %p2784_p5 = scmp.ne.s32.totalorder %s3401_s11, %s2783_s10  ;;  %p2787_p6 = scmp.lt.u32.totalorder %s2783_s10, %s3401_s11 }
 0x5d1   :  { %p2789_p7 = pnand %p2787_p6, %p2784_p5 }
 0x5d3   :  { %2792 = shalt.err (!%p2789_p7)
}
 0x5d4   :  { %2172 = dma.vmem_to_hbm [thread:$0]  %s2170_s20, 32, %s3401_s11, [#allocation4]  }
 0x5d5   :  { %2793 = dma.done.wait [#allocation4], 32  }
 0x5d6   :  { %2794 = vsyncadd [#allocation4], 4294967264 }
 0x5d7   :  { %2176 = vsyncpa [#allocation4], 1 }

</bundles_post_ra>
